<compile_context>
chip_gen: v6e
topology: v6e:2x2x1
jax: 0.10.0
libtpu: 0.0.40
codegen_flags: <defaults>
</compile_context>

<pallas_src>
import jax
import jax.numpy as jnp
from jax.experimental import pallas as pl
from jax.experimental.pallas import tpu as pltpu

STATE_DIM = 4
HIDDEN = 16
ACTION_DIM = 2


def net_kernel(x_ref, w1_ref, b1_ref, w2_ref, b2_ref, o_ref):
    """One batch tile.

    x_ref  : [tb, STATE_DIM]      batch-major input tile (PyTorch layout)
    w1_ref : [HIDDEN, STATE_DIM]  PyTorch [out, in] layout
    b1_ref : [HIDDEN, 1]
    w2_ref : [ACTION_DIM, HIDDEN]
    b2_ref : [ACTION_DIM, 1]
    o_ref  : [ACTION_DIM, tb]     feature-major output tile (lane-dense stores)
    """
    x = x_ref[...]

    # fc1 on the MXU, feature-major result: h[H, tb] = w1 @ x^T.
    # The x relayout is folded into the dot as a transposed-RHS contraction.
    h = jax.lax.dot_general(
        w1_ref[...], x,
        dimension_numbers=(((1,), (1,)), ((), ())),
        preferred_element_type=jnp.float32)
    # Bias + ReLU on dense [H, tb] vregs (1 vadd + 1 vmax per vreg).
    h = jnp.maximum(h + b1_ref[...], 0.0)

    # Output layer on the MXU (canonical matmul): o[A, tb] = w2 @ h.
    o = jnp.dot(w2_ref[...], h, preferred_element_type=jnp.float32) + b2_ref[...]

    o_ref[...] = o.astype(o_ref.dtype)


def _xla_forward(x, w1, b1, w2, b2):
    """Plain XLA reference / small-batch bypass (PyTorch semantics)."""
    h = jnp.maximum(x @ w1.T + b1, 0.0)
    return h @ w2.T + b2


def net_forward_feature_major(x, w1, b1, w2, b2, *, tile_b=1024):
    """Pallas path. x: [B, STATE_DIM]; returns Q-values feature-major [ACTION_DIM, B]."""
    B = x.shape[0]

    x = x.astype(jnp.float32)
    # O(1) parameter plumbing (tiny constants, not per-sample traffic).
    b1c = jnp.reshape(b1, (HIDDEN, 1)).astype(jnp.float32)
    b2c = jnp.reshape(b2, (ACTION_DIM, 1)).astype(jnp.float32)

    # Batch tile: >= 2 grid steps whenever B > 128 so both v7x TCs get work,
    # capped at tile_b lanes.  No explicit padding: the trailing partial block
    # is masked by Pallas (per-sample independence keeps garbage lanes local).
    tb = min(tile_b, max(128, pl.cdiv(pl.cdiv(B, 2), 128) * 128))
    grid = (pl.cdiv(B, tb),)

    return pl.pallas_call(
        net_kernel,
        out_shape=jax.ShapeDtypeStruct((ACTION_DIM, B), jnp.float32),
        grid_spec=pltpu.PrefetchScalarGridSpec(
            num_scalar_prefetch=0,
            grid=grid,
            in_specs=[
                pl.BlockSpec((tb, STATE_DIM), lambda i: (i, 0)),        # x tile
                pl.BlockSpec((HIDDEN, STATE_DIM), lambda i: (0, 0)),    # w1
                pl.BlockSpec((HIDDEN, 1), lambda i: (0, 0)),            # b1
                pl.BlockSpec((ACTION_DIM, HIDDEN), lambda i: (0, 0)),   # w2
                pl.BlockSpec((ACTION_DIM, 1), lambda i: (0, 0)),        # b2
            ],
            out_specs=pl.BlockSpec((ACTION_DIM, tb), lambda i: (0, i)),  # lane-dense
        ),
        compiler_params=pltpu.CompilerParams(
            dimension_semantics=("parallel",)),
    )(x, w1.astype(jnp.float32), b1c, w2.astype(jnp.float32), b2c)


def net_forward(x, w1, b1, w2, b2, *, tile_b=1024, min_pallas_batch=512):
    """Drop-in PyTorch-semantics forward: x [B, 4] -> Q-values [B, 2]."""
    B = x.shape[0]
    if B < min_pallas_batch:
        # Tiny batches (the DQN action-selection case) are launch-overhead bound;
        # use the fused XLA path.
        return _xla_forward(x, w1, b1, w2, b2)
    out_fm = net_forward_feature_major(x, w1, b1, w2, b2, tile_b=tile_b)
    # Single tiny [2, B] -> [B, 2] transpose to honor the PyTorch return layout;
    # feature-major consumers should call net_forward_feature_major directly.
    return out_fm.T


def init_params(key):
    """Mirror the PyTorch module: weights ~ N(0, 0.1) (explicit in Net.__init__),
    biases ~ U(-1/sqrt(fan_in), 1/sqrt(fan_in)) (nn.Linear default)."""
    k1, k2, k3, k4 = jax.random.split(key, 4)
    w1 = 0.1 * jax.random.normal(k1, (HIDDEN, STATE_DIM), dtype=jnp.float32)
    bound1 = 1.0 / jnp.sqrt(jnp.float32(STATE_DIM))
    b1 = jax.random.uniform(k2, (HIDDEN,), dtype=jnp.float32,
                            minval=-bound1, maxval=bound1)
    w2 = 0.1 * jax.random.normal(k3, (ACTION_DIM, HIDDEN), dtype=jnp.float32)
    bound2 = 1.0 / jnp.sqrt(jnp.float32(HIDDEN))
    b2 = jax.random.uniform(k4, (ACTION_DIM,), dtype=jnp.float32,
                            minval=-bound2, maxval=bound2)
    return w1, b1, w2, b2


if __name__ == "__main__":
    key = jax.random.PRNGKey(0)
    kx, kx2, kp = jax.random.split(key, 3)
    w1, b1, w2, b2 = init_params(kp)

    # Tolerance note: the MXU f32 path is typically within ~1e-5 of the exact
    # f32 result; 2e-3 leaves margin for any bf16-pass matmul decomposition
    # while still catching real layout/weight/bias bugs (which are O(0.1)).
    ATOL = RTOL = 2e-3

    # Small demo batch (DQN action selection) -- force the Pallas path once.
    B = 2
    x = jax.random.normal(kx, (B, STATE_DIM), dtype=jnp.float32)
    out = jax.block_until_ready(net_forward(x, w1, b1, w2, b2, min_pallas_batch=0))
    ref = _xla_forward(x, w1, b1, w2, b2)
    assert out.shape == (B, ACTION_DIM)
    assert jnp.allclose(out, ref, atol=ATOL, rtol=RTOL)

    # Default dispatch at tiny batch takes the fused-XLA bypass (exact).
    out_bypass = jax.block_until_ready(net_forward(x, w1, b1, w2, b2))
    assert jnp.allclose(out_bypass, ref, atol=1e-6, rtol=1e-6)

    # Larger batch: multi-step "parallel" grid + masked partial trailing block.
    B_big = 3000
    x_big = jax.random.normal(kx2, (B_big, STATE_DIM), dtype=jnp.float32)
    out_big = jax.block_until_ready(net_forward(x_big, w1, b1, w2, b2))
    ref_big = _xla_forward(x_big, w1, b1, w2, b2)
    assert out_big.shape == (B_big, ACTION_DIM)
    assert jnp.allclose(out_big, ref_big, atol=ATOL, rtol=RTOL)

    print("KERNEL_OK")
</pallas_src>

<mosaic_0001>
module attributes {stable_mosaic.version = 11 : i64} {
  func.func @net_kernel(%arg0: i32, %arg1: memref<128x4xf32, #tpu.memory_space<vmem>>, %arg2: memref<16x4xf32, #tpu.memory_space<vmem>>, %arg3: memref<16x1xf32, #tpu.memory_space<vmem>>, %arg4: memref<2x16xf32, #tpu.memory_space<vmem>>, %arg5: memref<2x1xf32, #tpu.memory_space<vmem>>, %arg6: memref<2x128xf32, #tpu.memory_space<vmem>>) attributes {dimension_semantics = [#tpu.dimension_semantics<parallel>], iteration_bounds = array<i64: 1>, scalar_prefetch = 0 : i64, scratch_operands = 0 : i64, tpu.core_type = #tpu.core_type<tc>, window_params = [{transform_indices = @transform_0, window_bounds = array<i64: 128, 4>}, {pipeline_mode = #tpu.pipeline_mode<synchronous>, transform_indices = @transform_1, window_bounds = array<i64: 16, 4>}, {pipeline_mode = #tpu.pipeline_mode<synchronous>, transform_indices = @transform_2, window_bounds = array<i64: 16, 1>}, {pipeline_mode = #tpu.pipeline_mode<synchronous>, transform_indices = @transform_3, window_bounds = array<i64: 2, 16>}, {pipeline_mode = #tpu.pipeline_mode<synchronous>, transform_indices = @transform_4, window_bounds = array<i64: 2, 1>}, {transform_indices = @transform_5, window_bounds = array<i64: 2, 128>}]} {
    %c0 = arith.constant 0 : index
    %c0_0 = arith.constant 0 : index
    %0 = vector.load %arg1[%c0, %c0_0] : memref<128x4xf32, #tpu.memory_space<vmem>>, vector<128x4xf32>
    %c0_1 = arith.constant 0 : index
    %c0_2 = arith.constant 0 : index
    %1 = vector.load %arg2[%c0_1, %c0_2] : memref<16x4xf32, #tpu.memory_space<vmem>>, vector<16x4xf32>
    %cst = arith.constant dense<0.000000e+00> : vector<16x128xf32>
    %2 = tpu.matmul %1, %0, %cst {dimension_numbers = #tpu.dot_dimension_numbers<[1], [1], [0], [0], [0, 0, 1, 0], [], []>} : vector<16x4xf32>, vector<128x4xf32>, vector<16x128xf32> -> vector<16x128xf32>
    %c0_3 = arith.constant 0 : index
    %c0_4 = arith.constant 0 : index
    %3 = vector.load %arg3[%c0_3, %c0_4] : memref<16x1xf32, #tpu.memory_space<vmem>>, vector<16x1xf32>
    %4 = vector.broadcast %3 : vector<16x1xf32> to vector<16x128xf32>
    %5 = arith.addf %2, %4 : vector<16x128xf32>
    %cst_5 = arith.constant 0.000000e+00 : f32
    %6 = vector.broadcast %cst_5 : f32 to vector<16x128xf32>
    %7 = arith.maximumf %5, %6 : vector<16x128xf32>
    %c0_6 = arith.constant 0 : index
    %c0_7 = arith.constant 0 : index
    %8 = vector.load %arg4[%c0_6, %c0_7] : memref<2x16xf32, #tpu.memory_space<vmem>>, vector<2x16xf32>
    %cst_8 = arith.constant dense<0.000000e+00> : vector<2x128xf32>
    %9 = tpu.matmul %8, %7, %cst_8 {dimension_numbers = #tpu.dot_dimension_numbers<[1], [0], [0], [1], [0, 0, 1, 1], [], []>} : vector<2x16xf32>, vector<16x128xf32>, vector<2x128xf32> -> vector<2x128xf32>
    %c0_9 = arith.constant 0 : index
    %c0_10 = arith.constant 0 : index
    %10 = vector.load %arg5[%c0_9, %c0_10] : memref<2x1xf32, #tpu.memory_space<vmem>>, vector<2x1xf32>
    %11 = vector.broadcast %10 : vector<2x1xf32> to vector<2x128xf32>
    %12 = arith.addf %9, %11 : vector<2x128xf32>
    %c0_11 = arith.constant 0 : index
    %c0_12 = arith.constant 0 : index
    %13 = vector.load %arg6[%c0_11, %c0_12] : memref<2x128xf32, #tpu.memory_space<vmem>>, vector<2x128xf32>
    tpu.vector_store %arg6[%c0_11, %c0_12], %12 {strides = array<i32>} : memref<2x128xf32, #tpu.memory_space<vmem>>, vector<2x128xf32>,
    return
  }
  func.func @transform_0(%arg0: i32) -> (i32, i32) {
    %c0_i32 = arith.constant 0 : i32
    %c0_i32_0 = arith.constant 0 : i32
    return %arg0, %c0_i32 : i32, i32
  }
  func.func @transform_1(%arg0: i32) -> (i32, i32) {
    %c0_i32 = arith.constant 0 : i32
    %c0_i32_0 = arith.constant 0 : i32
    %c0_i32_1 = arith.constant 0 : i32
    return %c0_i32, %c0_i32_0 : i32, i32
  }
  func.func @transform_2(%arg0: i32) -> (i32, i32) {
    %c0_i32 = arith.constant 0 : i32
    %c0_i32_0 = arith.constant 0 : i32
    %c0_i32_1 = arith.constant 0 : i32
    return %c0_i32, %c0_i32_0 : i32, i32
  }
  func.func @transform_3(%arg0: i32) -> (i32, i32) {
    %c0_i32 = arith.constant 0 : i32
    %c0_i32_0 = arith.constant 0 : i32
    %c0_i32_1 = arith.constant 0 : i32
    return %c0_i32, %c0_i32_0 : i32, i32
  }
  func.func @transform_4(%arg0: i32) -> (i32, i32) {
    %c0_i32 = arith.constant 0 : i32
    %c0_i32_0 = arith.constant 0 : i32
    %c0_i32_1 = arith.constant 0 : i32
    return %c0_i32, %c0_i32_0 : i32, i32
  }
  func.func @transform_5(%arg0: i32) -> (i32, i32) {
    %c0_i32 = arith.constant 0 : i32
    %c0_i32_0 = arith.constant 0 : i32
    return %c0_i32, %arg0 : i32, i32
  }
}

</mosaic_0001>

<bundles_post_ra>
// kernel: tpu_custom_call.1
= control target key start
LH: loop header
LB: loop body
LE: loop exit
PB: predicated region body
PF: predicated region fallthrough
CT: control target
= control target key end

     0   :  { %vm51_vm0 = vcmask 31744   ;;  %v389_v2 = vmov 0   ;;  %s526_s0 = inlined_call_operand.vmem [shape: f32[2,4], index: 0, kind: input, shape index: {}]   ;;  %s527_s1 = inlined_call_operand.vmem [shape: f32[16,4], index: 1, kind: input, shape index: {}]   ;;  %s528_s2 = inlined_call_operand.vmem [shape: f32[16,1], index: 2, kind: input, shape index: {}]   ;;  %s529_s3 = inlined_call_operand.vmem [shape: f32[2,16], index: 3, kind: input, shape index: {}]   ;;  %s530_s4 = inlined_call_operand.vmem [shape: f32[2,1], index: 4, kind: input, shape index: {}]   ;;  %s531_s5 = inlined_call_operand.hbm [shape: f32[2,2], index: 5, kind: output, shape index: {}]  }
   0x1   :  { %v36_v0 = vld [vmem:[%s526_s0 + $0x78] sm:$0xff]  ;;  %v35_v1 = vld [vmem:[%s526_s0 + $0x70] sm:$0xff]  ;;  %365 = vset.pattern.permute.xlu0 %v389_v2  ;;  %366 = vset.pattern.permute.xlu1 %v389_v2  ;;  %v34_v3 = vld [vmem:[%s526_s0 + $0x68] sm:$0xff] }
   0x2   :  { %319 = vmatprep.subr.msk.mxu0 %vm51_vm0, %v36_v0  ;;  %v37_v4 = vld [vmem:[%s527_s1] sm:$0xff]  ;;  %v40_v5 = vld [vmem:[%s528_s2 + $0x8] sm:$0xff] }
   0x3   :  { %320 = vmatpush3.xpose.msk.msra.mxu0 %vm51_vm0, %v36_v0  ;;  %351 = vmatprep.mubr.msk.f32.mxu0 %vm51_vm0, %v37_v4 }
   0x4   :  { %321 = vmatprep.subr.msk.mxu0 %vm51_vm0, %v35_v1 }
   0x7   :  { %322 = vmatpush3.xpose.msk.msra.mxu0 %vm51_vm0, %v35_v1 }
   0x8   :  { %10 = vsyncpa [#allocation3], 0  ;;  %323 = vmatprep.subr.msk.mxu0 %vm51_vm0, %v34_v3  ;;  %48 = vperm.xlu0 %365, %v40_v5   ;;  %v33_v6 = vld [vmem:[%s526_s0 + $0x60] sm:$0xff]  ;;  %v32_v8 = vld [vmem:[%s526_s0 + $0x58] sm:$0xff]  ;;  %v390_v21 = vmov 0.0   ;;  %vm391_vm1 = vmmov 0  }
   0x9   :  { %v39_v7 = vld [vmem:[%s528_s2] sm:$0xff]  ;;  %v31_v9 = vld [vmem:[%s526_s0 + $0x50] sm:$0xff]  ;;  %v30_v10 = vld [vmem:[%s526_s0 + $0x48] sm:$0xff]  ;;  %354 = vmatprep.subr.mxu1 %v390_v21  ;;  %358 = vmatprep.mubr.msk.f32.mxu1 %vm391_vm1, %v390_v21  ;;  %vm190_vm2 = vcmask 130048  }
   0xa   :  { %v29_v11 = vld [vmem:[%s526_s0 + $0x40] sm:$0xff]  ;;  %v28_v12 = vld [vmem:[%s526_s0 + $0x38] sm:$0xff]  ;;  %v27_v13 = vld [vmem:[%s526_s0 + $0x30] sm:$0xff] }
   0xb   :  { %324 = vmatpush3.xpose.msk.msra.mxu0 %vm51_vm0, %v34_v3  ;;  %v26_v14 = vld [vmem:[%s526_s0 + $0x28] sm:$0xff]  ;;  %v25_v15 = vld [vmem:[%s526_s0 + $0x20] sm:$0xff]  ;;  %v24_v16 = vld [vmem:[%s526_s0 + $0x18] sm:$0xff] }
   0xc   :  { %325 = vmatprep.subr.msk.mxu0 %vm51_vm0, %v33_v6  ;;  %43 = vperm.xlu0 %365, %v39_v7   ;;  %v23_v17 = vld [vmem:[%s526_s0 + $0x10] sm:$0xff]  ;;  %v22_v18 = vld [vmem:[%s526_s0 + $0x8] sm:$0xff]  ;;  %v21_v19 = vld [vmem:[%s526_s0] sm:$0xff] }
   0xd   :  { %v38_v20 = vld [vmem:[%s527_s1 + $0x8] sm:$0xff]  ;;  %v184_v22 = vld [vmem:[%s530_s4] sm:$0x3]  ;;  %s392_s4 = smov [#allocation2]  }
   0xe   :  { %187 = vperm.xlu1 %366, %v184_v22   ;;  %v183_v31 = vld [vmem:[%s529_s3] sm:$0x3]  ;;  %s271_s9 = sshll.u32 %s392_s4, 4  ;;  %s272_s9 = int_to_ptr.vmem [resolvable:$true] %s271_s9 }
   0xf   :  { %326 = vmatpush3.xpose.msk.msra.mxu0 %vm51_vm0, %v33_v6  ;;  %s367_s10 = scalar_lea.vmem %s272_s9, 32  ;;  %p372_p1 = scmp.lt.s32.totalorder %s272_s9, %s272_s9 }
  0x10   :  { %327 = vmatprep.subr.msk.mxu0 %vm51_vm0, %v32_v8  ;;  %p368_p0 = scmp.ne.s32.totalorder %s272_s9, %s367_s10  ;;  %p373_p2 = scmp.lt.s32.totalorder %s367_s10, %s367_s10 }
  0x12   :  { %p374_p3 = por %p373_p2, %p372_p1 }
  0x13   :  { %328 = vmatpush3.xpose.msk.msra.mxu0 %vm51_vm0, %v32_v8 }
  0x14   :  { %329 = vmatprep.subr.msk.mxu0 %vm51_vm0, %v31_v9  ;;  %p375_p4 = pnand %p374_p3, %p368_p0 }
  0x17   :  { %330 = vmatpush3.xpose.msk.msra.mxu0 %vm51_vm0, %v31_v9 }
  0x18   :  { %331 = vmatprep.subr.msk.mxu0 %vm51_vm0, %v30_v10 }
  0x1b   :  { %332 = vmatpush3.xpose.msk.msra.mxu0 %vm51_vm0, %v30_v10 }
  0x1c   :  { %333 = vmatprep.subr.msk.mxu0 %vm51_vm0, %v29_v11 }
  0x1f   :  { %334 = vmatpush3.xpose.msk.msra.mxu0 %vm51_vm0, %v29_v11 }
  0x20   :  { %335 = vmatprep.subr.msk.mxu0 %vm51_vm0, %v28_v12 }
  0x23   :  { %336 = vmatpush3.xpose.msk.msra.mxu0 %vm51_vm0, %v28_v12 }
  0x24   :  { %337 = vmatprep.subr.msk.mxu0 %vm51_vm0, %v27_v13 }
  0x27   :  { %338 = vmatpush3.xpose.msk.msra.mxu0 %vm51_vm0, %v27_v13 }
  0x28   :  { %339 = vmatprep.subr.msk.mxu0 %vm51_vm0, %v26_v14 }
  0x2b   :  { %340 = vmatpush3.xpose.msk.msra.mxu0 %vm51_vm0, %v26_v14 }
  0x2c   :  { %341 = vmatprep.subr.msk.mxu0 %vm51_vm0, %v25_v15 }
  0x2f   :  { %342 = vmatpush3.xpose.msk.msra.mxu0 %vm51_vm0, %v25_v15 }
  0x30   :  { %343 = vmatprep.subr.msk.mxu0 %vm51_vm0, %v24_v16 }
  0x33   :  { %344 = vmatpush3.xpose.msk.msra.mxu0 %vm51_vm0, %v24_v16 }
  0x34   :  { %345 = vmatprep.subr.msk.mxu0 %vm51_vm0, %v23_v17 }
  0x37   :  { %346 = vmatpush3.xpose.msk.msra.mxu0 %vm51_vm0, %v23_v17 }
  0x38   :  { %347 = vmatprep.subr.msk.mxu0 %vm51_vm0, %v22_v18 }
  0x3b   :  { %348 = vmatpush3.xpose.msk.msra.mxu0 %vm51_vm0, %v22_v18 }
  0x3c   :  { %349 = vmatprep.subr.msk.mxu0 %vm51_vm0, %v21_v19 }
  0x3f   :  { %350 = vmatpush3.xpose.msk.msra.mxu0 %vm51_vm0, %v21_v19 }
  0x42   :  { %352 = vmatmul.mubr.msk.f32.vlgmr.msra.gmra.mxu0 %vm51_vm0, %v38_v20 }
  0x83   :  { %v49_v23 = vpop.permute.xlu0 %48 }
  0x87   :  { %v44_v26 = vpop.permute.xlu0 %43 }
  0x89   :  { %v188_v32 = vpop.permute.xlu1 %187 }
 0x102   :  { %v353_v24 = vpop.f32.mrf.mxu0 }
 0x103   :  { %v178_v25 = vadd.f32 %v353_v24, %v49_v23 }
 0x104   :  { %v172_v27 = vpop.f32.mrf.mxu0 }
 0x105   :  { %v182_v28 = vmax.f32 %v178_v25, 0.0  ;;  %v173_v29 = vadd.f32 %v172_v27, %v44_v26 }
 0x107   :  { %v181_v30 = vmax.f32 %v173_v29, 0.0  ;;  %355 = vmatpush3.msra.mxu1 %v182_v28 }
 0x108   :  { %356 = vmatprep.subr.mxu1 %v390_v21 }
 0x109   :  { %357 = vmatpush3.msra.mxu1 %v181_v30 }
 0x10a   :  { %359 = vmatmul.mubr.msk.f32.vlgmr.msra.gmra.mxu1 %vm190_vm2, %v183_v31 }
 0x1ca   :  { %v260_v33 = vpop.f32.mrf.mxu1 }
 0x1cb   :  { %v261_v34 = vadd.f32 %v260_v33, %v188_v32 }
 0x1cc   :  { %v360_v35 = vpop.f32.mrf.mxu1 }
 0x1cd   :  { %264 = vst [vmem:[#allocation2] sm:$0x3] %v261_v34 }
 0x1ce   :  { %378 = shalt.err (!%p375_p4)
}
 0x1cf   :  { %274 = dma.vmem_to_hbm [thread:$0]  %s272_s9, 32, %s531_s5, [#allocation3]  }
 0x1d0   :  { %387 = dma.done.wait [#allocation3], 32  }
 0x1d1   :  { %388 = vsyncadd [#allocation3], 4294967264 }
 0x1d2   :  { %278 = vsyncpa [#allocation3], 1 }

</bundles_post_ra>
